<compile_context>
chip_gen: v5e
topology: v5e:2x2
jax: 0.10.0
libtpu: 0.0.40
codegen_flags: <defaults>
</compile_context>

<pallas_src>
import functools

import jax
import jax.numpy as jnp
import numpy as np
from jax.experimental import pallas as pl
from jax.experimental.pallas import tpu as pltpu


def _round_up(x, m):
    return -(-x // m) * m


def _batch_tile(batch):
    """Pick the batch (sublane) tile.

    * multiple of 8 (sublane granularity)
    * as large as possible (<= 1024 rows) to amortize per-grid-step overhead
    * guarantees >= 2 grid steps whenever the batch allows, so the second
      TensorCore on v7x gets work under dimension_semantics=("parallel",).
    """
    b8 = _round_up(batch, 8)
    tb = min(1024, b8)
    if b8 > 8 and b8 // tb < 2:
        tb = max(8, _round_up(-(-b8 // 2), 8))  # ~half the batch, 8-aligned
    return tb


def _prim_translation_dense_kernel(x_ref, fcw_ref, fcb_ref, trw_ref, trb_ref, o_ref):
    # x_ref:  (TB, C)   activation rows at spatial index (0,0,0), batch-padded
    # fcw_ref:(C, C)    dense 1x1x1 conv weight, stored as (Cin, Cout)
    # fcb_ref:(1, C)    dense bias
    # trw_ref:(C, 3P)   translation conv weight, stored as (Cin, Cout)
    # trb_ref:(1, 3P)   translation bias
    # o_ref:  (TB, 3P)
    x = x_ref[...]
    if x.dtype != jnp.float32:          # cast only when the input is not f32
        x = x.astype(jnp.float32)
    h = jnp.dot(x, fcw_ref[...], preferred_element_type=jnp.float32) + fcb_ref[...]
    h = jnp.maximum(h, 0.2 * h)         # LeakyReLU(0.2)
    t = jnp.dot(h, trw_ref[...], preferred_element_type=jnp.float32) + trb_ref[...]
    o_ref[...] = (jnp.tanh(t) * 0.51).astype(o_ref.dtype)


def _prim_translation_kernel(x_ref, trw_ref, trb_ref, o_ref):
    x = x_ref[...]
    if x.dtype != jnp.float32:
        x = x.astype(jnp.float32)
    t = jnp.dot(x, trw_ref[...], preferred_element_type=jnp.float32) + trb_ref[...]
    o_ref[...] = (jnp.tanh(t) * 0.51).astype(o_ref.dtype)


def init_params(key, n_primitives, input_channels, make_dense=False):
    """Deterministic parameter init (PyTorch-style uniform fan-in bounds).

    Conv3d weights are stored pre-transposed as (C_in, C_out) since the 1x1x1
    convs are plain channel matmuls.  No lane padding is stored (the kernel's
    output/weight blocks use the full, unpadded 3*P last dim).
    """
    keys = jax.random.split(key, 4)
    C = input_channels
    P3 = n_primitives * 3
    bound = 1.0 / np.sqrt(C)
    params = {}
    if make_dense:
        params["fc_w"] = jax.random.uniform(keys[0], (C, C), jnp.float32, -bound, bound)
        params["fc_b"] = jax.random.uniform(keys[1], (1, C), jnp.float32, -bound, bound)
    params["tr_w"] = jax.random.uniform(keys[2], (C, P3), jnp.float32, -bound, bound)
    params["tr_b"] = jax.random.uniform(keys[3], (1, P3), jnp.float32, -bound, bound)
    return params


@functools.partial(jax.jit, static_argnames=("n_primitives", "make_dense"))
def prim_translation_forward(X, params, *, n_primitives, make_dense=False):
    """X: (B, C, D, H, W) float32 (NCDHW, same as PyTorch).  Returns (B, 3*P)."""
    B, C = X.shape[0], X.shape[1]
    P3 = n_primitives * 3

    # Only spatial location (0,0,0) contributes; slice + pad fuse under jit.
    x0 = X[:, :, 0, 0, 0].astype(jnp.float32)               # (B, C)

    tb = _batch_tile(B)
    b_pad = _round_up(B, tb)
    x0p = x0 if b_pad == B else jnp.pad(x0, ((0, b_pad - B), (0, 0)))

    grid = (b_pad // tb,)
    x_spec = pl.BlockSpec((tb, C), lambda i: (i, 0))
    # Output block last dim equals the full array dim (3*P), so no lane pad /
    # write amplification; batch rows are the only padding (sliced off below).
    out_spec = pl.BlockSpec((tb, P3), lambda i: (i, 0))

    def w_spec(shape):
        # Grid-invariant operands: constant index_map -> no re-DMA per step.
        return pl.BlockSpec(shape, lambda i: (0, 0))

    out_shape = jax.ShapeDtypeStruct((b_pad, P3), jnp.float32)
    cparams = pltpu.CompilerParams(dimension_semantics=("parallel",))

    if make_dense:
        out = pl.pallas_call(
            _prim_translation_dense_kernel,
            out_shape=out_shape,
            grid=grid,
            in_specs=[x_spec,
                      w_spec((C, C)), w_spec((1, C)),
                      w_spec((C, P3)), w_spec((1, P3))],
            out_specs=out_spec,
            compiler_params=cparams,
        )(x0p, params["fc_w"], params["fc_b"], params["tr_w"], params["tr_b"])
    else:
        out = pl.pallas_call(
            _prim_translation_kernel,
            out_shape=out_shape,
            grid=grid,
            in_specs=[x_spec, w_spec((C, P3)), w_spec((1, P3))],
            out_specs=out_spec,
            compiler_params=cparams,
        )(x0p, params["tr_w"], params["tr_b"])

    # Drop batch padding (fused into the same jitted program).
    return out if b_pad == B else out[:B]


def _reference(X, params, n_primitives, make_dense):
    """Pure-JAX reference mimicking the PyTorch forward exactly."""
    x0 = X[:, :, 0, 0, 0]
    h = x0
    if make_dense:
        h = x0 @ params["fc_w"] + params["fc_b"]
        h = jnp.where(h > 0, h, 0.2 * h)
    t = h @ params["tr_w"] + params["tr_b"]
    return jnp.tanh(t) * 0.51


if __name__ == "__main__":
    key = jax.random.PRNGKey(0)
    k_x, k_p, k_x2 = jax.random.split(key, 3)

    # Small shapes consistent with the module: B=2, C=32 channels,
    # n_primitives=5 (-> 15 outputs), spatial D=H=W=4.
    B, C, D, H, W = 2, 32, 4, 4, 4
    n_primitives = 5

    X = jax.random.normal(k_x, (B, C, D, H, W), dtype=jnp.float32)

    # make_dense=True path
    params = init_params(k_p, n_primitives, C, make_dense=True)
    out = prim_translation_forward(X, params, n_primitives=n_primitives, make_dense=True)
    out = jax.block_until_ready(out)
    ref = _reference(X, params, n_primitives, True)
    assert out.shape == (B, n_primitives * 3), out.shape
    np.testing.assert_allclose(np.asarray(out), np.asarray(ref), rtol=1e-5, atol=1e-5)

    # make_dense=False path
    params_nd = init_params(k_p, n_primitives, C, make_dense=False)
    out_nd = jax.block_until_ready(
        prim_translation_forward(X, params_nd, n_primitives=n_primitives, make_dense=False))
    ref_nd = _reference(X, params_nd, n_primitives, False)
    np.testing.assert_allclose(np.asarray(out_nd), np.asarray(ref_nd), rtol=1e-5, atol=1e-5)

    # Moderately larger batch: exercises batch padding + a 2-step "parallel"
    # grid (the v7x two-TensorCore path) with the same kernels.
    B2 = 40
    X2 = jax.random.normal(k_x2, (B2, C, D, H, W), dtype=jnp.float32)
    out2 = jax.block_until_ready(
        prim_translation_forward(X2, params, n_primitives=n_primitives, make_dense=True))
    ref2 = _reference(X2, params, n_primitives, True)
    assert out2.shape == (B2, n_primitives * 3), out2.shape
    np.testing.assert_allclose(np.asarray(out2), np.asarray(ref2), rtol=1e-5, atol=1e-5)

    print("KERNEL_OK")
</pallas_src>

<mosaic_0001>
module attributes {stable_mosaic.version = 11 : i64} {
  func.func @_prim_translation_dense_kernel(%arg0: i32, %arg1: memref<8x32xf32, #tpu.memory_space<vmem>>, %arg2: memref<32x32xf32, #tpu.memory_space<vmem>>, %arg3: memref<1x32xf32, #tpu.memory_space<vmem>>, %arg4: memref<32x15xf32, #tpu.memory_space<vmem>>, %arg5: memref<1x15xf32, #tpu.memory_space<vmem>>, %arg6: memref<8x15xf32, #tpu.memory_space<vmem>>) attributes {dimension_semantics = [#tpu.dimension_semantics<parallel>], iteration_bounds = array<i64: 1>, scalar_prefetch = 0 : i64, scratch_operands = 0 : i64, tpu.core_type = #tpu.core_type<tc>, window_params = [{transform_indices = @transform_0, window_bounds = array<i64: 8, 32>}, {pipeline_mode = #tpu.pipeline_mode<synchronous>, transform_indices = @transform_1, window_bounds = array<i64: 32, 32>}, {pipeline_mode = #tpu.pipeline_mode<synchronous>, transform_indices = @transform_2, window_bounds = array<i64: 1, 32>}, {pipeline_mode = #tpu.pipeline_mode<synchronous>, transform_indices = @transform_3, window_bounds = array<i64: 32, 15>}, {pipeline_mode = #tpu.pipeline_mode<synchronous>, transform_indices = @transform_4, window_bounds = array<i64: 1, 15>}, {transform_indices = @transform_5, window_bounds = array<i64: 8, 15>}]} {
    %c0 = arith.constant 0 : index
    %c0_0 = arith.constant 0 : index
    %0 = vector.load %arg1[%c0, %c0_0] : memref<8x32xf32, #tpu.memory_space<vmem>>, vector<8x32xf32>
    %c0_1 = arith.constant 0 : index
    %c0_2 = arith.constant 0 : index
    %1 = vector.load %arg2[%c0_1, %c0_2] : memref<32x32xf32, #tpu.memory_space<vmem>>, vector<32x32xf32>
    %cst = arith.constant dense<0.000000e+00> : vector<8x32xf32>
    %2 = tpu.matmul %0, %1, %cst {dimension_numbers = #tpu.dot_dimension_numbers<[1], [0], [0], [1], [0, 0, 1, 1], [], []>} : vector<8x32xf32>, vector<32x32xf32>, vector<8x32xf32> -> vector<8x32xf32>
    %c0_3 = arith.constant 0 : index
    %c0_4 = arith.constant 0 : index
    %3 = vector.load %arg3[%c0_3, %c0_4] : memref<1x32xf32, #tpu.memory_space<vmem>>, vector<1x32xf32>
    %4 = vector.broadcast %3 : vector<1x32xf32> to vector<8x32xf32>
    %5 = arith.addf %2, %4 : vector<8x32xf32>
    %cst_5 = arith.constant 2.000000e-01 : f32
    %6 = vector.broadcast %cst_5 : f32 to vector<8x32xf32>
    %7 = arith.mulf %6, %5 : vector<8x32xf32>
    %8 = arith.maximumf %5, %7 : vector<8x32xf32>
    %c0_6 = arith.constant 0 : index
    %c0_7 = arith.constant 0 : index
    %9 = vector.load %arg4[%c0_6, %c0_7] : memref<32x15xf32, #tpu.memory_space<vmem>>, vector<32x15xf32>
    %cst_8 = arith.constant dense<0.000000e+00> : vector<8x15xf32>
    %10 = tpu.matmul %8, %9, %cst_8 {dimension_numbers = #tpu.dot_dimension_numbers<[1], [0], [0], [1], [0, 0, 1, 1], [], []>} : vector<8x32xf32>, vector<32x15xf32>, vector<8x15xf32> -> vector<8x15xf32>
    %c0_9 = arith.constant 0 : index
    %c0_10 = arith.constant 0 : index
    %11 = vector.load %arg5[%c0_9, %c0_10] : memref<1x15xf32, #tpu.memory_space<vmem>>, vector<1x15xf32>
    %12 = vector.broadcast %11 : vector<1x15xf32> to vector<8x15xf32>
    %13 = arith.addf %10, %12 : vector<8x15xf32>
    %14 = math.tanh %13 : vector<8x15xf32>
    %cst_11 = arith.constant 5.100000e-01 : f32
    %15 = vector.broadcast %cst_11 : f32 to vector<8x15xf32>
    %16 = arith.mulf %14, %15 : vector<8x15xf32>
    %c0_12 = arith.constant 0 : index
    %c0_13 = arith.constant 0 : index
    %17 = vector.load %arg6[%c0_12, %c0_13] : memref<8x15xf32, #tpu.memory_space<vmem>>, vector<8x15xf32>
    tpu.vector_store %arg6[%c0_12, %c0_13], %16 {strides = array<i32>} : memref<8x15xf32, #tpu.memory_space<vmem>>, vector<8x15xf32>,
    return
  }
  func.func @transform_0(%arg0: i32) -> (i32, i32) {
    %c0_i32 = arith.constant 0 : i32
    %c0_i32_0 = arith.constant 0 : i32
    return %arg0, %c0_i32 : i32, i32
  }
  func.func @transform_1(%arg0: i32) -> (i32, i32) {
    %c0_i32 = arith.constant 0 : i32
    %c0_i32_0 = arith.constant 0 : i32
    %c0_i32_1 = arith.constant 0 : i32
    return %c0_i32, %c0_i32_0 : i32, i32
  }
  func.func @transform_2(%arg0: i32) -> (i32, i32) {
    %c0_i32 = arith.constant 0 : i32
    %c0_i32_0 = arith.constant 0 : i32
    %c0_i32_1 = arith.constant 0 : i32
    return %c0_i32, %c0_i32_0 : i32, i32
  }
  func.func @transform_3(%arg0: i32) -> (i32, i32) {
    %c0_i32 = arith.constant 0 : i32
    %c0_i32_0 = arith.constant 0 : i32
    %c0_i32_1 = arith.constant 0 : i32
    return %c0_i32, %c0_i32_0 : i32, i32
  }
  func.func @transform_4(%arg0: i32) -> (i32, i32) {
    %c0_i32 = arith.constant 0 : i32
    %c0_i32_0 = arith.constant 0 : i32
    %c0_i32_1 = arith.constant 0 : i32
    return %c0_i32, %c0_i32_0 : i32, i32
  }
  func.func @transform_5(%arg0: i32) -> (i32, i32) {
    %c0_i32 = arith.constant 0 : i32
    %c0_i32_0 = arith.constant 0 : i32
    return %arg0, %c0_i32 : i32, i32
  }
}

</mosaic_0001>

<bundles_post_ra>
// kernel: prim_translation_forward.1
= control target key start
LH: loop header
LB: loop body
LE: loop exit
PB: predicated region body
PF: predicated region fallthrough
CT: control target
= control target key end

     0   :  { %vm29_vm0 = vcmask 261120   ;;  %vm88_vm1 = vcmask 121856   ;;  %s168_s1 = inlined_call_operand.vmem [shape: f32[32,32], index: 1, kind: input, shape index: {}]   ;;  %s169_s2 = inlined_call_operand.vmem [shape: f32[1,32], index: 2, kind: input, shape index: {}]   ;;  %s170_s0 = inlined_call_operand.vmem [shape: f32[8,32], index: 0, kind: input, shape index: {}]   ;;  %s171_s4 = inlined_call_operand.vmem [shape: f32[1,15], index: 4, kind: input, shape index: {}]   ;;  %s172_s3 = inlined_call_operand.vmem [shape: f32[32,15], index: 3, kind: input, shape index: {}]   ;;  %s173_s5 = inlined_call_operand.vmem [shape: f32[8,15], index: 5, kind: output, shape index: {}]  }
   0x1   :  { %v24_v0 = vld [vmem:[%s168_s1 + $0x18] sm:$0xff]  ;;  %v23_v1 = vld [vmem:[%s168_s1 + $0x10] sm:$0xff]  ;;  %v22_v2 = vld [vmem:[%s168_s1 + $0x8] sm:$0xff] }
   0x2   :  { %45 = vmatpush.msra.mxu0 %v24_v0  ;;  %v21_v3 = vld [vmem:[%s168_s1] sm:$0xff]  ;;  %v58_v5 = vld [vmem:[%s172_s3 + $0x18] sm:$0xff]  ;;  %v57_v6 = vld [vmem:[%s172_s3 + $0x10] sm:$0xff] }
   0x3   :  { %v20_v4 = vld [vmem:[%s170_s0] sm:$0xff]  ;;  %78 = vmatpush.msra.mxu1 %v58_v5  ;;  %v56_v7 = vld [vmem:[%s172_s3 + $0x8] sm:$0xff] }
   0x4   :  { %46 = vmatpush.msra.mxu0 %v23_v1  ;;  %v55_v8 = vld [vmem:[%s172_s3] sm:$0xff] }
   0x5   :  { %79 = vmatpush.msra.mxu1 %v57_v6  ;;  %v96_v9 = vld [vmem:[%s169_s2] ss:$0 sm:$0xff] }
   0x6   :  { %47 = vmatpush.msra.mxu0 %v22_v2  ;;  %v97_v14 = vld [vmem:[%s171_s4] ss:$0 sm:$0xff] }
   0x7   :  { %80 = vmatpush.msra.mxu1 %v56_v7 }
   0x8   :  { %48 = vmatpush.msra.mxu0 %v21_v3 }
   0x9   :  { %94 = vmatmul.msk.f32.vlgmr.msra.gmra.mxu0 %vm29_vm0, %v20_v4  ;;  %81 = vmatpush.msra.mxu1 %v55_v8 }
  0x86   :  { %v50_v10 = vpop.f32.mrf.mxu0 }
  0x87   :  { %v51_v11 = vadd.f32 %v96_v9, %v50_v10 }
  0x89   :  { %v53_v12 = vmul.f32 0.2, %v51_v11 }
  0x8b   :  { %v54_v13 = vmax.f32 %v51_v11, %v53_v12 }
  0x8d   :  { %95 = vmatmul.msk.f32.vlgmr.msra.gmra.mxu1 %vm29_vm0, %v54_v13 }
 0x10a   :  { %v83_v15 = vpop.f32.mrf.mxu1 }
 0x10b   :  { %v84_v16 = vadd.f32 %v97_v14, %v83_v15 }
 0x10d   :  { %98 = vtanh.f32 %v84_v16 }
 0x113   :  { %v99_v17 = vpop.eup %98 }
 0x114   :  { %v87_v18 = vmul.f32 0.51, %v99_v17 }
 0x116   :  { %89 = vst.msk [vmem:[%s173_s5] sm:$0xff] %vm88_vm1, %v87_v18 }

</bundles_post_ra>
